<compile_context>
chip_gen: v7x
topology: tpu7x:2x2x1
jax: 0.10.0
libtpu: 0.0.40
codegen_flags: <defaults>
</compile_context>

<pallas_src>
import math

import jax
import jax.numpy as jnp
from jax.experimental import pallas as pl
from jax.experimental.pallas import tpu as pltpu


def _kl_partial_kernel(p_ref, q_ref, o_ref):
    """Per-grid-block partial KL sums.

    Each grid step reads one (TR, L) tile of p and q and writes an (8, L)
    lane-dense partial-sum block.  There is no state carried across grid
    steps, so the grid axis is fully 'parallel' (megacore-shardable on v7x).
    """
    tr, l = p_ref.shape
    acc = jnp.zeros((8, l), jnp.float32)
    # Walk the tile in sublane groups of 8: keeps live vregs small and the hot
    # loop on loads + EUP (log / reciprocal) + VPU adds.
    for r in range(0, tr, 8):
        p = p_ref[r:r + 8, :].astype(jnp.float32)
        q = q_ref[r:r + 8, :].astype(jnp.float32)
        # p * (log p - log q) == p * log(p / q): one EUP log + one reciprocal
        # per element instead of two logs (EUP is the single-slot unit).
        # NOTE: exact zeros in p still yield NaN, same as the PyTorch module.
        acc = acc + p * jnp.log(p / q)
    o_ref[0] = acc


def _round_up(x, m):
    return ((x + m - 1) // m) * m


def kl_pallas(prob_p, prob_q, *, row_tile=512, lane_tile=512):
    """KL(p || q) = mean_over_leading_dims( sum_over_last_dim( p*(log p - log q) ) ).

    Works for arbitrary leading dims / last-dim size and f32 or bf16 inputs
    (bf16 halves HBM traffic; compute is always f32 in the kernel).
    Returns a float32 scalar.
    """
    assert prob_p.shape == prob_q.shape
    assert row_tile % 8 == 0 and lane_tile % 128 == 0

    n_rows = math.prod(prob_p.shape[:-1])  # rows the mean is taken over
    n_elems = prob_p.size

    # Flatten + pad with ones (zero KL contribution), reshape lane-dense.
    L = lane_tile
    rows = (n_elems + L - 1) // L
    TR = min(row_tile, _round_up(rows, 8))          # big tiles, always 8-aligned
    rows_padded = _round_up(rows, TR)
    pad = rows_padded * L - n_elems

    p2 = jnp.pad(prob_p.reshape(-1), (0, pad), constant_values=1).reshape(rows_padded, L)
    q2 = jnp.pad(prob_q.reshape(-1), (0, pad), constant_values=1).reshape(rows_padded, L)

    num_blocks = rows_padded // TR

    partials = pl.pallas_call(
        _kl_partial_kernel,
        out_shape=jax.ShapeDtypeStruct((num_blocks, 8, L), jnp.float32),
        grid_spec=pltpu.PrefetchScalarGridSpec(
            num_scalar_prefetch=0,
            grid=(num_blocks,),
            in_specs=[
                pl.BlockSpec((TR, L), lambda i: (i, 0)),
                pl.BlockSpec((TR, L), lambda i: (i, 0)),
            ],
            out_specs=pl.BlockSpec((1, 8, L), lambda i: (i, 0, 0)),
        ),
        compiler_params=pltpu.CompilerParams(
            # Independent per-block partials -> no carried reduction; the row
            # axis can be split across TensorCores on v7x.
            dimension_semantics=("parallel",),
            # 2 inputs x 2 pipeline buffers x (512*512*4 B) ~= 4 MiB at the
            # defaults: fits v5e's 16 MiB scoped default and v7x's 64 MiB
            # physical VMEM with ample headroom; 32 MiB allows larger row_tile.
            vmem_limit_bytes=32 * 1024 * 1024,
        ),
    )(p2, q2)

    # Tiny finishing reduction (num_blocks*8*L elements) + mean normalization.
    total = jnp.sum(partials, dtype=jnp.float32)
    return total / jnp.float32(n_rows)


if __name__ == "__main__":
    key = jax.random.PRNGKey(0)
    kp, kq, kp2, kq2 = jax.random.split(key, 4)

    # Case 1: batch of 16 distributions over 128 classes (f32).
    R, C = 16, 128
    prob_p = jax.nn.softmax(jax.random.normal(kp, (R, C), dtype=jnp.float32), axis=-1)
    prob_q = jax.nn.softmax(jax.random.normal(kq, (R, C), dtype=jnp.float32), axis=-1)
    out = jax.block_until_ready(kl_pallas(prob_p, prob_q))
    ref = jnp.mean(jnp.sum(prob_p * (jnp.log(prob_p) - jnp.log(prob_q)), axis=-1))
    assert jnp.allclose(out, ref, rtol=2e-5, atol=1e-6), (out, ref)

    # Case 2: 3-D leading dims, last dim not a multiple of 128.
    B, S, C2 = 2, 8, 96
    prob_p2 = jax.nn.softmax(jax.random.normal(kp2, (B, S, C2), dtype=jnp.float32), axis=-1)
    prob_q2 = jax.nn.softmax(jax.random.normal(kq2, (B, S, C2), dtype=jnp.float32), axis=-1)
    out2 = jax.block_until_ready(kl_pallas(prob_p2, prob_q2))
    ref2 = jnp.mean(jnp.sum(prob_p2 * (jnp.log(prob_p2) - jnp.log(prob_q2)), axis=-1))
    assert jnp.allclose(out2, ref2, rtol=2e-5, atol=1e-6), (out2, ref2)

    print("KERNEL_OK")
</pallas_src>

<mosaic_0001>
module attributes {stable_mosaic.version = 11 : i64} {
  func.func @_kl_partial_kernel(%arg0: i32, %arg1: memref<8x512xf32, #tpu.memory_space<vmem>>, %arg2: memref<8x512xf32, #tpu.memory_space<vmem>>, %arg3: memref<1x8x512xf32, #tpu.memory_space<vmem>>) attributes {dimension_semantics = [#tpu.dimension_semantics<parallel>], iteration_bounds = array<i64: 1>, scalar_prefetch = 0 : i64, scratch_operands = 0 : i64, tpu.core_type = #tpu.core_type<tc>, window_params = [{transform_indices = @transform_0, window_bounds = array<i64: 8, 512>}, {transform_indices = @transform_1, window_bounds = array<i64: 8, 512>}, {transform_indices = @transform_2, window_bounds = array<i64: 1, 8, 512>}]} {
    %cst = arith.constant 0.000000e+00 : f32
    %0 = vector.broadcast %cst : f32 to vector<8x512xf32>
    %c0 = arith.constant 0 : index
    %c0_0 = arith.constant 0 : index
    %1 = vector.load %arg1[%c0, %c0_0] : memref<8x512xf32, #tpu.memory_space<vmem>>, vector<8x512xf32>
    %c0_1 = arith.constant 0 : index
    %c0_2 = arith.constant 0 : index
    %2 = vector.load %arg2[%c0_1, %c0_2] : memref<8x512xf32, #tpu.memory_space<vmem>>, vector<8x512xf32>
    %3 = arith.divf %1, %2 : vector<8x512xf32>
    %4 = math.log %3 : vector<8x512xf32>
    %5 = arith.mulf %1, %4 : vector<8x512xf32>
    %6 = arith.addf %0, %5 : vector<8x512xf32>
    %c0_3 = arith.constant 0 : index
    %c0_4 = arith.constant 0 : index
    %c0_5 = arith.constant 0 : index
    %7 = vector.load %arg3[%c0_3, %c0_4, %c0_5] : memref<1x8x512xf32, #tpu.memory_space<vmem>>, vector<1x8x512xf32>
    %8 = vector.shape_cast %7 : vector<1x8x512xf32> to vector<8x512xf32>
    %9 = vector.shape_cast %6 : vector<8x512xf32> to vector<1x8x512xf32>
    tpu.vector_store %arg3[%c0_3, %c0_4, %c0_5], %9 {strides = array<i32>} : memref<1x8x512xf32, #tpu.memory_space<vmem>>, vector<1x8x512xf32>,
    return
  }
  func.func @transform_0(%arg0: i32) -> (i32, i32) {
    %c0_i32 = arith.constant 0 : i32
    %c0_i32_0 = arith.constant 0 : i32
    return %arg0, %c0_i32 : i32, i32
  }
  func.func @transform_1(%arg0: i32) -> (i32, i32) {
    %c0_i32 = arith.constant 0 : i32
    %c0_i32_0 = arith.constant 0 : i32
    return %arg0, %c0_i32 : i32, i32
  }
  func.func @transform_2(%arg0: i32) -> (i32, i32, i32) {
    %c0_i32 = arith.constant 0 : i32
    %c0_i32_0 = arith.constant 0 : i32
    %c0_i32_1 = arith.constant 0 : i32
    return %arg0, %c0_i32, %c0_i32_0 : i32, i32, i32
  }
}

</mosaic_0001>

<bundles_post_ra>
// kernel: tpu_custom_call.1
= control target key start
LH: loop header
LB: loop body
LE: loop exit
PB: predicated region body
PF: predicated region fallthrough
CT: control target
= control target key end

     0   :  { %7 = vsyncpa [#allocation3], 0  ;;  %s233_s0 = inlined_call_operand.hbm [shape: f32[8,512], index: 0, kind: input, shape index: {}]   ;;  %s234_s1 = inlined_call_operand.hbm [shape: f32[8,512], index: 1, kind: input, shape index: {}]   ;;  %s235_s2 = inlined_call_operand.hbm [shape: f32[1,8,512], index: 2, kind: output, shape index: {}]  }
   0x1   :  { %8 = vsyncpa [#allocation6], 0 }
   0x2   :  { %9 = vsyncpa [#allocation4], 0  ;;  %s179_s9 = smov [#allocation2]   ;;  %s180_s11 = smov [#allocation5]  }
   0x3   :  { %s16_s10 = sshll.u32 %s179_s9, 4  ;;  %s26_s12 = sshll.u32 %s180_s11, 4  ;;  %s17_s10 = int_to_ptr.vmem [resolvable:$true] %s16_s10  ;;  %s27_s12 = int_to_ptr.vmem [resolvable:$true] %s26_s12 }
   0x4   :  { %s107_s15 = scalar_lea.hbm %s233_s0, 512 }
   0x5   :  { %p108_p0 = scmp.ne.s32.totalorder %s233_s0, %s107_s15  ;;  %p111_p1 = scmp.lt.u32.totalorder %s107_s15, %s233_s0 }
   0x7   :  { %p113_p2 = pnand %p111_p1, %p108_p0 }
   0x9   :  { %116 = shalt.err (!%p113_p2)
}
   0xa   :  { %s117_s20 = scalar_lea.vmem %s17_s10, 512  ;;  %p122_p4 = scmp.lt.s32.totalorder %s17_s10, %s17_s10 }
   0xb   :  { %p118_p3 = scmp.ne.s32.totalorder %s17_s10, %s117_s20  ;;  %p123_p5 = scmp.lt.s32.totalorder %s117_s20, %s117_s20 }
   0xd   :  { %p124_p6 = por %p123_p5, %p122_p4 }
   0xf   :  { %p125_p7 = pnand %p124_p6, %p118_p3 }
  0x11   :  { %128 = shalt.err (!%p125_p7)
}
  0x12   :  { %19 = dma.hbm_to_vmem [thread:$0]  %s233_s0, 512, %s17_s10, [#allocation3]  }
  0x13   :  { %s129_s25 = scalar_lea.hbm %s234_s1, 512 }
  0x14   :  { %p130_p8 = scmp.ne.s32.totalorder %s234_s1, %s129_s25  ;;  %p133_p9 = scmp.lt.u32.totalorder %s129_s25, %s234_s1 }
  0x16   :  { %p135_p10 = pnand %p133_p9, %p130_p8 }
  0x18   :  { %138 = shalt.err (!%p135_p10)
}
  0x19   :  { %s139_s30 = scalar_lea.vmem %s27_s12, 512  ;;  %p144_p12 = scmp.lt.s32.totalorder %s27_s12, %s27_s12 }
  0x1a   :  { %p140_p11 = scmp.ne.s32.totalorder %s27_s12, %s139_s30  ;;  %p145_p13 = scmp.lt.s32.totalorder %s139_s30, %s139_s30 }
  0x1c   :  { %p146_p0 = por %p145_p13, %p144_p12 }
  0x1e   :  { %p147_p1 = pnand %p146_p0, %p140_p11 }
  0x20   :  { %150 = shalt.err (!%p147_p1)
}
  0x21   :  { %29 = dma.hbm_to_vmem [thread:$0]  %s234_s1, 512, %s27_s12, [#allocation6]  }
  0x22   :  { %173 = dma.done.wait [#allocation3], 512  }
  0x23   :  { %174 = vsyncadd [#allocation3], 4294966784 }
  0x24   :  { %175 = dma.done.wait [#allocation6], 512  }
  0x25   :  { %176 = vsyncadd [#allocation6], 4294966784  ;;  %v40_v0 = vld [vmem:[#allocation5] sm:$0xff]  ;;  %v41_v1 = vld [vmem:[#allocation5 + $0x8] sm:$0xff]  ;;  %s181_s1 = smov [#allocation7]  }
  0x26   :  { %91 = vrcp.f32 %v40_v0  ;;  %v42_v2 = vld [vmem:[#allocation5 + $0x10] sm:$0xff]  ;;  %v43_v3 = vld [vmem:[#allocation5 + $0x18] sm:$0xff]  ;;  %v36_v4 = vld [vmem:[#allocation2] sm:$0xff]  ;;  %s78_s4 = sshll.u32 %s181_s1, 4  ;;  %s79_s4 = int_to_ptr.vmem [resolvable:$true] %s78_s4 }
  0x27   :  { %93 = vrcp.f32 %v41_v1  ;;  %v37_v5 = vld [vmem:[#allocation2 + $0x8] sm:$0xff]  ;;  %v38_v7 = vld [vmem:[#allocation2 + $0x10] sm:$0xff]  ;;  %v39_v10 = vld [vmem:[#allocation2 + $0x18] sm:$0xff]  ;;  %s151_s5 = scalar_lea.vmem %s79_s4, 512  ;;  %p156_p3 = scmp.lt.s32.totalorder %s79_s4, %s79_s4 }
  0x28   :  { %95 = vrcp.f32 %v42_v2  ;;  %p152_p2 = scmp.ne.s32.totalorder %s79_s4, %s151_s5  ;;  %p157_p4 = scmp.lt.s32.totalorder %s151_s5, %s151_s5 }
  0x29   :  { %97 = vrcp.f32 %v43_v3 }
  0x2a   :  { %p158_p5 = por %p157_p4, %p156_p3 }
  0x2c   :  { %p159_p6 = pnand %p158_p5, %p152_p2 }
  0x30   :  { %v92_v6 = vpop.eup %91 }
  0x31   :  { %v94_v8 = vpop.eup %93  ;;  %v45_v9 = vmul.f32 %v92_v6, %v36_v4 }
  0x32   :  { %v96_v11 = vpop.eup %95  ;;  %v47_v12 = vmul.f32 %v94_v8, %v37_v5 }
  0x33   :  { %v98_v13 = vpop.eup %97  ;;  %99 = vlog2.f32 %v45_v9  ;;  %v49_v14 = vmul.f32 %v96_v11, %v38_v7 }
  0x34   :  { %101 = vlog2.f32 %v47_v12  ;;  %v51_v15 = vmul.f32 %v98_v13, %v39_v10 }
  0x35   :  { %103 = vlog2.f32 %v49_v14 }
  0x36   :  { %105 = vlog2.f32 %v51_v15 }
  0x3d   :  { %v100_v16 = vpop.eup %99 }
  0x3e   :  { %v102_v17 = vpop.eup %101  ;;  %v53_v18 = vmul.f32 0.6931472, %v100_v16 }
  0x3f   :  { %v104_v19 = vpop.eup %103  ;;  %v55_v20 = vmul.f32 0.6931472, %v102_v17 }
  0x40   :  { %v106_v21 = vpop.eup %105  ;;  %v60_v22 = vmul.f32 %v53_v18, %v36_v4  ;;  %v57_v23 = vmul.f32 0.6931472, %v104_v19 }
  0x41   :  { %v61_v24 = vmul.f32 %v55_v20, %v37_v5  ;;  %v59_v25 = vmul.f32 0.6931472, %v106_v21 }
  0x42   :  { %68 = vst [vmem:[#allocation7] sm:$0xff] %v60_v22  ;;  %v62_v26 = vmul.f32 %v57_v23, %v38_v7 }
  0x43   :  { %69 = vst [vmem:[#allocation7 + $0x8] sm:$0xff] %v61_v24  ;;  %v63_v27 = vmul.f32 %v59_v25, %v39_v10 }
  0x44   :  { %70 = vst [vmem:[#allocation7 + $0x10] sm:$0xff] %v62_v26 }
  0x45   :  { %71 = vst [vmem:[#allocation7 + $0x18] sm:$0xff] %v63_v27 }
  0x46   :  { %162 = shalt.err (!%p159_p6)
}
  0x47   :  { %s163_s8 = scalar_lea.hbm %s235_s2, 512 }
  0x48   :  { %p164_p7 = scmp.ne.s32.totalorder %s235_s2, %s163_s8  ;;  %p167_p8 = scmp.lt.u32.totalorder %s163_s8, %s235_s2 }
  0x4a   :  { %p169_p9 = pnand %p167_p8, %p164_p7 }
  0x4c   :  { %172 = shalt.err (!%p169_p9)
}
  0x4d   :  { %81 = dma.vmem_to_hbm [thread:$0]  %s79_s4, 512, %s235_s2, [#allocation4]  }
  0x4e   :  { %177 = dma.done.wait [#allocation4], 512  }
  0x4f   :  { %178 = vsyncadd [#allocation4], 4294966784 }
  0x50   :  { %85 = vsyncpa [#allocation3], 1 }
  0x51   :  { %86 = vsyncpa [#allocation6], 1 }
  0x52   :  { %87 = vsyncpa [#allocation4], 1 }

</bundles_post_ra>
